<compile_context>
chip_gen: v6e
topology: v6e:2x2x1
jax: 0.10.0
libtpu: 0.0.40
codegen_flags: <defaults>
</compile_context>

<pallas_src>
import jax
import jax.numpy as jnp
from jax.experimental import pallas as pl
from jax.experimental.pallas import tpu as pltpu

_INV_SQRT2 = 0.7071067811865476


def _exact_gelu(x):
    # Matches torch.nn.functional.gelu (approximate='none'): erf-based GELU, f32.
    return 0.5 * x * (1.0 + jax.lax.erf(x * _INV_SQRT2))


# ---------------------------------------------------------------------------
# Fused kernel: embed (l==0) -> [fc1+GELU -> hook store -> fc2 -> residual] per
# layer grid step -> mean-pool + head (l==last)
# ---------------------------------------------------------------------------
def _make_kernel(tokens_per_image, compute_dtype):
    P = tokens_per_image

    def kernel(tokens_ref, embed_w_ref, embed_b_ref,
               fc1_w_ref, fc1_b_ref, fc2_w_ref, fc2_b_ref,
               head_w_ref, head_b_ref,
               high_ref, logits_ref,
               h_ref):
        l = pl.program_id(1)
        last_l = pl.num_programs(1) - 1

        # layer 0 of this M-tile: patch embedding into the f32 residual scratch
        @pl.when(l == 0)
        def _():
            h_ref[...] = (
                jnp.dot(tokens_ref[...], embed_w_ref[...],
                        preferred_element_type=jnp.float32)
                + embed_b_ref[...])

        # FFN block l (weights streamed per layer via the inner grid axis)
        h = h_ref[...]                                              # f32 residual
        pre = (jnp.dot(h.astype(compute_dtype), fc1_w_ref[0],
                       preferred_element_type=jnp.float32) + fc1_b_ref[0])
        act = _exact_gelu(pre)                                      # f32, exact erf GELU
        high_ref[0] = act.astype(high_ref.dtype)                    # hooked activation
        h = h + (jnp.dot(act.astype(compute_dtype), fc2_w_ref[0],
                         preferred_element_type=jnp.float32) + fc2_b_ref[0])
        h_ref[...] = h

        # last layer: per-image mean pool + classification head (128-lane padded)
        @pl.when(l == last_l)
        def _():
            tile_m, _ = h.shape
            tile_b = tile_m // P
            row = jax.lax.broadcasted_iota(jnp.int32, (tile_b, tile_m), 0)
            col = jax.lax.broadcasted_iota(jnp.int32, (tile_b, tile_m), 1)
            pool = jnp.where((col >= row * P) & (col < (row + 1) * P),
                             1.0 / P, 0.0).astype(jnp.float32)      # tiny [tile_b, tile_m]
            pooled = jnp.dot(pool, h, preferred_element_type=jnp.float32)
            logits_ref[...] = (
                jnp.dot(pooled.astype(compute_dtype), head_w_ref[...],
                        preferred_element_type=jnp.float32)
                + head_b_ref[...]).astype(logits_ref.dtype)

    return kernel


# ---------------------------------------------------------------------------
# Synthetic ViT-style classifier containing PositionWiseFeedForward blocks
# (fc1 -> GELU -> fc2), whose fc1 outputs are the hooked activations.
# ---------------------------------------------------------------------------
def init_params(key, in_ch=3, patch=8, hidden=32, mlp=64, n_layers=2, n_classes=10):
    patch_dim = in_ch * patch * patch
    keys = jax.random.split(key, 2 + 4 * n_layers + 2)
    scale = 0.02
    p = {
        "patch": patch,
        "embed_w": scale * jax.random.normal(keys[0], (patch_dim, hidden), jnp.float32),
        "embed_b": scale * jax.random.normal(keys[1], (hidden,), jnp.float32),
        "blocks": [],
        "head_w": scale * jax.random.normal(keys[-2], (hidden, n_classes), jnp.float32),
        "head_b": scale * jax.random.normal(keys[-1], (n_classes,), jnp.float32),
    }
    for l in range(n_layers):
        k0, k1, k2, k3 = keys[2 + 4 * l: 6 + 4 * l]
        p["blocks"].append({
            "fc1_w": scale * jax.random.normal(k0, (hidden, mlp), jnp.float32),
            "fc1_b": scale * jax.random.normal(k1, (mlp,), jnp.float32),
            "fc2_w": scale * jax.random.normal(k2, (mlp, hidden), jnp.float32),
            "fc2_b": scale * jax.random.normal(k3, (hidden,), jnp.float32),
        })
    return p


def _patchify(x, patch):
    # NCHW -> [B, P, C*patch*patch]   (layout plumbing, plain JAX)
    B, C, H, W = x.shape
    hp, wp = H // patch, W // patch
    x = x.reshape(B, C, hp, patch, wp, patch)
    x = x.transpose(0, 2, 4, 1, 3, 5)            # [B, hp, wp, C, p, p]
    return x.reshape(B, hp * wp, C * patch * patch)


def _pick_tile_b(B, P, target_rows=512):
    """Largest batch-tile (divisor of B) keeping ~target_rows tokens per M tile."""
    tile_b = max(1, min(B, target_rows // max(P, 1)))
    while B % tile_b:
        tile_b -= 1
    return tile_b


def vit_gelu_hook_forward(params, x, compute_dtype=jnp.bfloat16):
    """Equivalent of ViTGeLUHook.forward: returns ({'high': [...]}, logits)."""
    out_dtype = x.dtype
    patch = params["patch"]
    tokens = _patchify(x, patch)                        # [B, P, patch_dim]
    B, P, patch_dim = tokens.shape
    tok2d = tokens.reshape(B * P, patch_dim).astype(compute_dtype)

    hidden = params["embed_w"].shape[1]
    mlp = params["blocks"][0]["fc1_w"].shape[1]
    n_layers = len(params["blocks"])
    n_classes = params["head_w"].shape[1]

    # MXU operands in bf16 (f32 accumulation in-kernel); biases stay f32.
    embed_w = params["embed_w"].astype(compute_dtype)
    embed_b = params["embed_b"].reshape(1, hidden).astype(jnp.float32)
    # Stacked per-layer weights -> layer grid axis streams them (double-buffered DMA).
    fc1_w = jnp.stack([b["fc1_w"] for b in params["blocks"]]).astype(compute_dtype)
    fc1_b = jnp.stack([b["fc1_b"].reshape(1, mlp) for b in params["blocks"]]).astype(jnp.float32)
    fc2_w = jnp.stack([b["fc2_w"] for b in params["blocks"]]).astype(compute_dtype)
    fc2_b = jnp.stack([b["fc2_b"].reshape(1, hidden) for b in params["blocks"]]).astype(jnp.float32)

    # Pad the head output to 128 lanes (unmasked stores); sliced back below.
    n_cls_pad = ((n_classes + 127) // 128) * 128
    head_w = jnp.zeros((hidden, n_cls_pad), compute_dtype).at[:, :n_classes].set(
        params["head_w"].astype(compute_dtype))
    head_b = jnp.zeros((1, n_cls_pad), jnp.float32).at[:, :n_classes].set(
        params["head_b"].astype(jnp.float32))

    tile_b = _pick_tile_b(B, P)
    tile_m = tile_b * P
    grid = (B // tile_b, n_layers)        # M tiles ("parallel"), layers ("arbitrary")
    # TODO(synk): at production shapes, pad tile_b/B so logits blocks satisfy the
    # (8,128) sublane rule, and raise vmem_limit_bytes per generation
    # (v7x 64 MiB -> tile_m~512; v5e/v6e 128 MiB -> tile_m up to 1024-2048).

    in_specs = [
        pl.BlockSpec((tile_m, patch_dim), lambda m, l: (m, 0)),     # tokens
        pl.BlockSpec((patch_dim, hidden), lambda m, l: (0, 0)),     # embed_w
        pl.BlockSpec((1, hidden),         lambda m, l: (0, 0)),     # embed_b
        pl.BlockSpec((1, hidden, mlp),    lambda m, l: (l, 0, 0)),  # fc1_w (streamed per layer)
        pl.BlockSpec((1, 1, mlp),         lambda m, l: (l, 0, 0)),  # fc1_b
        pl.BlockSpec((1, mlp, hidden),    lambda m, l: (l, 0, 0)),  # fc2_w (streamed per layer)
        pl.BlockSpec((1, 1, hidden),      lambda m, l: (l, 0, 0)),  # fc2_b
        pl.BlockSpec((hidden, n_cls_pad), lambda m, l: (0, 0)),     # head_w (padded)
        pl.BlockSpec((1, n_cls_pad),      lambda m, l: (0, 0)),     # head_b (padded)
    ]
    out_shape = (
        jax.ShapeDtypeStruct((n_layers, B * P, mlp), out_dtype),    # hooked gelu(fc1)
        jax.ShapeDtypeStruct((B, n_cls_pad), out_dtype),            # padded logits
    )
    out_specs = (
        pl.BlockSpec((1, tile_m, mlp),    lambda m, l: (l, m, 0)),  # per-layer writeback
        pl.BlockSpec((tile_b, n_cls_pad), lambda m, l: (m, 0)),     # written at last layer
    )

    high_stack, logits_pad = pl.pallas_call(
        _make_kernel(P, compute_dtype),
        out_shape=out_shape,
        grid=grid,
        in_specs=in_specs,
        out_specs=out_specs,
        scratch_shapes=[pltpu.VMEM((tile_m, hidden), jnp.float32)],  # residual h carry
        compiler_params=pltpu.CompilerParams(
            dimension_semantics=("parallel", "arbitrary")),
    )(tok2d, embed_w, embed_b, fc1_w, fc1_b, fc2_w, fc2_b, head_w, head_b)

    high = [high_stack[l].reshape(B, P, mlp) for l in range(n_layers)]
    return {"high": high}, logits_pad[:, :n_classes]


# Pure-JAX f32 reference (same math as the torch module / hooks).
def vit_gelu_hook_reference(params, x):
    tokens = _patchify(x, params["patch"])
    h = tokens @ params["embed_w"] + params["embed_b"]
    high = []
    for blk in params["blocks"]:
        pre = h @ blk["fc1_w"] + blk["fc1_b"]
        act = _exact_gelu(pre)
        high.append(act)
        h = h + act @ blk["fc2_w"] + blk["fc2_b"]
    pooled = h.mean(axis=1)
    logits = pooled @ params["head_w"] + params["head_b"]
    return {"high": high}, logits


if __name__ == "__main__":
    key = jax.random.PRNGKey(0)
    pkey, xkey = jax.random.split(key)

    params = init_params(pkey, in_ch=3, patch=8, hidden=32, mlp=64,
                         n_layers=2, n_classes=10)

    # classifier input: NCHW image tensor
    x = jax.random.normal(xkey, (2, 3, 16, 16), jnp.float32)

    acts, out = vit_gelu_hook_forward(params, x)
    jax.block_until_ready((acts, out))

    assert out.shape == (2, 10)
    assert len(acts["high"]) == 2 and acts["high"][0].shape == (2, 4, 64)

    # sanity vs. pure-JAX f32 reference (bf16 MXU inputs + f32 accumulation)
    ref_acts, ref_out = vit_gelu_hook_reference(params, x)
    assert float(jnp.max(jnp.abs(out - ref_out))) < 5e-2
    for a, r in zip(acts["high"], ref_acts["high"]):
        assert float(jnp.max(jnp.abs(a - r))) < 5e-2

    print("KERNEL_OK")
</pallas_src>

<mosaic_0001>
module attributes {stable_mosaic.version = 11 : i64} {
  func.func @kernel(%arg0: i32, %arg1: i32, %arg2: memref<8x192xbf16, #tpu.memory_space<vmem>>, %arg3: memref<192x32xbf16, #tpu.memory_space<vmem>>, %arg4: memref<1x32xf32, #tpu.memory_space<vmem>>, %arg5: memref<1x32x64xbf16, #tpu.memory_space<vmem>>, %arg6: memref<1x1x64xf32, #tpu.memory_space<vmem>>, %arg7: memref<1x64x32xbf16, #tpu.memory_space<vmem>>, %arg8: memref<1x1x32xf32, #tpu.memory_space<vmem>>, %arg9: memref<32x128xbf16, #tpu.memory_space<vmem>>, %arg10: memref<1x128xf32, #tpu.memory_space<vmem>>, %arg11: memref<1x8x64xf32, #tpu.memory_space<vmem>>, %arg12: memref<2x128xf32, #tpu.memory_space<vmem>>, %arg13: memref<8x32xf32, #tpu.memory_space<vmem>>) attributes {dimension_semantics = [#tpu.dimension_semantics<parallel>, #tpu.dimension_semantics<arbitrary>], iteration_bounds = array<i64: 1, 2>, scalar_prefetch = 0 : i64, scratch_operands = 1 : i64, tpu.core_type = #tpu.core_type<tc>, window_params = [{transform_indices = @transform_0, window_bounds = array<i64: 8, 192>}, {pipeline_mode = #tpu.pipeline_mode<synchronous>, transform_indices = @transform_1, window_bounds = array<i64: 192, 32>}, {pipeline_mode = #tpu.pipeline_mode<synchronous>, transform_indices = @transform_2, window_bounds = array<i64: 1, 32>}, {transform_indices = @transform_3, window_bounds = array<i64: 1, 32, 64>}, {transform_indices = @transform_4, window_bounds = array<i64: 1, 1, 64>}, {transform_indices = @transform_5, window_bounds = array<i64: 1, 64, 32>}, {transform_indices = @transform_6, window_bounds = array<i64: 1, 1, 32>}, {pipeline_mode = #tpu.pipeline_mode<synchronous>, transform_indices = @transform_7, window_bounds = array<i64: 32, 128>}, {pipeline_mode = #tpu.pipeline_mode<synchronous>, transform_indices = @transform_8, window_bounds = array<i64: 1, 128>}, {transform_indices = @transform_9, window_bounds = array<i64: 1, 8, 64>}, {transform_indices = @transform_10, window_bounds = array<i64: 2, 128>}]} {
    %c0_i32 = arith.constant 0 : i32
    %0 = arith.cmpi eq, %arg1, %c0_i32 : i32
    %1 = arith.extui %0 : i1 to i32
    %c0_i32_0 = arith.constant 0 : i32
    %2 = arith.cmpi ne, %1, %c0_i32_0 : i32
    scf.if %2 {
      %c0_24 = arith.constant 0 : index
      %c0_25 = arith.constant 0 : index
      %36 = vector.load %arg2[%c0_24, %c0_25] : memref<8x192xbf16, #tpu.memory_space<vmem>>, vector<8x192xbf16>
      %c0_26 = arith.constant 0 : index
      %c0_27 = arith.constant 0 : index
      %37 = vector.load %arg3[%c0_26, %c0_27] : memref<192x32xbf16, #tpu.memory_space<vmem>>, vector<192x32xbf16>
      %cst_28 = arith.constant dense<0.000000e+00> : vector<8x32xf32>
      %38 = tpu.matmul %36, %37, %cst_28 {dimension_numbers = #tpu.dot_dimension_numbers<[1], [0], [0], [1], [0, 0, 1, 1], [], []>} : vector<8x192xbf16>, vector<192x32xbf16>, vector<8x32xf32> -> vector<8x32xf32>
      %c0_29 = arith.constant 0 : index
      %c0_30 = arith.constant 0 : index
      %39 = vector.load %arg4[%c0_29, %c0_30] : memref<1x32xf32, #tpu.memory_space<vmem>>, vector<1x32xf32>
      %40 = vector.broadcast %39 : vector<1x32xf32> to vector<8x32xf32>
      %41 = arith.addf %38, %40 : vector<8x32xf32>
      %c0_31 = arith.constant 0 : index
      %c0_32 = arith.constant 0 : index
      %42 = vector.load %arg13[%c0_31, %c0_32] : memref<8x32xf32, #tpu.memory_space<vmem>>, vector<8x32xf32>
      tpu.vector_store %arg13[%c0_31, %c0_32], %41 {strides = array<i32>} : memref<8x32xf32, #tpu.memory_space<vmem>>, vector<8x32xf32>,
    } else {
    }
    %c0 = arith.constant 0 : index
    %c0_1 = arith.constant 0 : index
    %3 = vector.load %arg13[%c0, %c0_1] : memref<8x32xf32, #tpu.memory_space<vmem>>, vector<8x32xf32>
    %4 = arith.truncf %3 : vector<8x32xf32> to vector<8x32xbf16>
    %c0_2 = arith.constant 0 : index
    %c0_3 = arith.constant 0 : index
    %c0_4 = arith.constant 0 : index
    %5 = vector.load %arg5[%c0_2, %c0_3, %c0_4] : memref<1x32x64xbf16, #tpu.memory_space<vmem>>, vector<1x32x64xbf16>
    %6 = vector.shape_cast %5 : vector<1x32x64xbf16> to vector<32x64xbf16>
    %cst = arith.constant dense<0.000000e+00> : vector<8x64xf32>
    %7 = tpu.matmul %4, %6, %cst {dimension_numbers = #tpu.dot_dimension_numbers<[1], [0], [0], [1], [0, 0, 1, 1], [], []>} : vector<8x32xbf16>, vector<32x64xbf16>, vector<8x64xf32> -> vector<8x64xf32>
    %c0_5 = arith.constant 0 : index
    %c0_6 = arith.constant 0 : index
    %c0_7 = arith.constant 0 : index
    %8 = vector.load %arg6[%c0_5, %c0_6, %c0_7] : memref<1x1x64xf32, #tpu.memory_space<vmem>>, vector<1x1x64xf32>
    %9 = vector.shape_cast %8 : vector<1x1x64xf32> to vector<1x64xf32>
    %10 = vector.broadcast %9 : vector<1x64xf32> to vector<8x64xf32>
    %11 = arith.addf %7, %10 : vector<8x64xf32>
    %cst_8 = arith.constant 5.000000e-01 : f32
    %12 = vector.broadcast %cst_8 : f32 to vector<8x64xf32>
    %13 = arith.mulf %12, %11 : vector<8x64xf32>
    %cst_9 = arith.constant 0.707106769 : f32
    %14 = vector.broadcast %cst_9 : f32 to vector<8x64xf32>
    %15 = arith.mulf %11, %14 : vector<8x64xf32>
    %16 = math.erf %15 : vector<8x64xf32>
    %cst_10 = arith.constant 1.000000e+00 : f32
    %17 = vector.broadcast %cst_10 : f32 to vector<8x64xf32>
    %18 = arith.addf %17, %16 : vector<8x64xf32>
    %19 = arith.mulf %13, %18 : vector<8x64xf32>
    %c0_11 = arith.constant 0 : index
    %c0_12 = arith.constant 0 : index
    %c0_13 = arith.constant 0 : index
    %20 = vector.load %arg11[%c0_11, %c0_12, %c0_13] : memref<1x8x64xf32, #tpu.memory_space<vmem>>, vector<1x8x64xf32>
    %21 = vector.shape_cast %20 : vector<1x8x64xf32> to vector<8x64xf32>
    %22 = vector.shape_cast %19 : vector<8x64xf32> to vector<1x8x64xf32>
    tpu.vector_store %arg11[%c0_11, %c0_12, %c0_13], %22 {strides = array<i32>} : memref<1x8x64xf32, #tpu.memory_space<vmem>>, vector<1x8x64xf32>,
    %23 = arith.truncf %19 : vector<8x64xf32> to vector<8x64xbf16>
    %c0_14 = arith.constant 0 : index
    %c0_15 = arith.constant 0 : index
    %c0_16 = arith.constant 0 : index
    %24 = vector.load %arg7[%c0_14, %c0_15, %c0_16] : memref<1x64x32xbf16, #tpu.memory_space<vmem>>, vector<1x64x32xbf16>
    %25 = vector.shape_cast %24 : vector<1x64x32xbf16> to vector<64x32xbf16>
    %cst_17 = arith.constant dense<0.000000e+00> : vector<8x32xf32>
    %26 = tpu.matmul %23, %25, %cst_17 {dimension_numbers = #tpu.dot_dimension_numbers<[1], [0], [0], [1], [0, 0, 1, 1], [], []>} : vector<8x64xbf16>, vector<64x32xbf16>, vector<8x32xf32> -> vector<8x32xf32>
    %c0_18 = arith.constant 0 : index
    %c0_19 = arith.constant 0 : index
    %c0_20 = arith.constant 0 : index
    %27 = vector.load %arg8[%c0_18, %c0_19, %c0_20] : memref<1x1x32xf32, #tpu.memory_space<vmem>>, vector<1x1x32xf32>
    %28 = vector.shape_cast %27 : vector<1x1x32xf32> to vector<1x32xf32>
    %29 = vector.broadcast %28 : vector<1x32xf32> to vector<8x32xf32>
    %30 = arith.addf %26, %29 : vector<8x32xf32>
    %31 = arith.addf %3, %30 : vector<8x32xf32>
    %c0_21 = arith.constant 0 : index
    %c0_22 = arith.constant 0 : index
    %32 = vector.load %arg13[%c0_21, %c0_22] : memref<8x32xf32, #tpu.memory_space<vmem>>, vector<8x32xf32>
    tpu.vector_store %arg13[%c0_21, %c0_22], %31 {strides = array<i32>} : memref<8x32xf32, #tpu.memory_space<vmem>>, vector<8x32xf32>,
    %c1_i32 = arith.constant 1 : i32
    %33 = arith.cmpi eq, %arg1, %c1_i32 : i32
    %34 = arith.extui %33 : i1 to i32
    %c0_i32_23 = arith.constant 0 : i32
    %35 = arith.cmpi ne, %34, %c0_i32_23 : i32
    scf.if %35 {
      %36 = tpu.iota {dimensions = array<i32: 0>} : vector<2x8xi32>
      %37 = tpu.iota {dimensions = array<i32: 1>} : vector<2x8xi32>
      %c4_i32 = arith.constant 4 : i32
      %38 = vector.broadcast %c4_i32 : i32 to vector<2x8xi32>
      %39 = arith.muli %36, %38 : vector<2x8xi32>
      %40 = arith.cmpi sge, %37, %39 : vector<2x8xi32>
      %c1_i32_24 = arith.constant 1 : i32
      %41 = vector.broadcast %c1_i32_24 : i32 to vector<2x8xi32>
      %42 = arith.addi %36, %41 : vector<2x8xi32>
      %c4_i32_25 = arith.constant 4 : i32
      %43 = vector.broadcast %c4_i32_25 : i32 to vector<2x8xi32>
      %44 = arith.muli %42, %43 : vector<2x8xi32>
      %45 = arith.cmpi slt, %37, %44 : vector<2x8xi32>
      %46 = arith.andi %40, %45 : vector<2x8xi1>
      %cst_26 = arith.constant 2.500000e-01 : f32
      %cst_27 = arith.constant 0.000000e+00 : f32
      %47 = vector.broadcast %cst_26 : f32 to vector<2x8xf32>
      %48 = vector.broadcast %cst_27 : f32 to vector<2x8xf32>
      %49 = arith.select %46, %47, %48 : vector<2x8xi1>, vector<2x8xf32>
      %cst_28 = arith.constant dense<0.000000e+00> : vector<2x32xf32>
      %50 = tpu.matmul %49, %31, %cst_28 {dimension_numbers = #tpu.dot_dimension_numbers<[1], [0], [0], [1], [0, 0, 1, 1], [], []>} : vector<2x8xf32>, vector<8x32xf32>, vector<2x32xf32> -> vector<2x32xf32>
      %51 = arith.truncf %50 : vector<2x32xf32> to vector<2x32xbf16>
      %c0_29 = arith.constant 0 : index
      %c0_30 = arith.constant 0 : index
      %52 = vector.load %arg9[%c0_29, %c0_30] : memref<32x128xbf16, #tpu.memory_space<vmem>>, vector<32x128xbf16>
      %cst_31 = arith.constant dense<0.000000e+00> : vector<2x128xf32>
      %53 = tpu.matmul %51, %52, %cst_31 {dimension_numbers = #tpu.dot_dimension_numbers<[1], [0], [0], [1], [0, 0, 1, 1], [], []>} : vector<2x32xbf16>, vector<32x128xbf16>, vector<2x128xf32> -> vector<2x128xf32>
      %c0_32 = arith.constant 0 : index
      %c0_33 = arith.constant 0 : index
      %54 = vector.load %arg10[%c0_32, %c0_33] : memref<1x128xf32, #tpu.memory_space<vmem>>, vector<1x128xf32>
      %55 = vector.broadcast %54 : vector<1x128xf32> to vector<2x128xf32>
      %56 = arith.addf %53, %55 : vector<2x128xf32>
      %c0_34 = arith.constant 0 : index
      %c0_35 = arith.constant 0 : index
      %57 = vector.load %arg12[%c0_34, %c0_35] : memref<2x128xf32, #tpu.memory_space<vmem>>, vector<2x128xf32>
      tpu.vector_store %arg12[%c0_34, %c0_35], %56 {strides = array<i32>} : memref<2x128xf32, #tpu.memory_space<vmem>>, vector<2x128xf32>,
    } else {
    }
    return
  }
  func.func @transform_0(%arg0: i32, %arg1: i32) -> (i32, i32) {
    %c0_i32 = arith.constant 0 : i32
    %c0_i32_0 = arith.constant 0 : i32
    return %arg0, %c0_i32 : i32, i32
  }
  func.func @transform_1(%arg0: i32, %arg1: i32) -> (i32, i32) {
    %c0_i32 = arith.constant 0 : i32
    %c0_i32_0 = arith.constant 0 : i32
    %c0_i32_1 = arith.constant 0 : i32
    return %c0_i32, %c0_i32_0 : i32, i32
  }
  func.func @transform_2(%arg0: i32, %arg1: i32) -> (i32, i32) {
    %c0_i32 = arith.constant 0 : i32
    %c0_i32_0 = arith.constant 0 : i32
    %c0_i32_1 = arith.constant 0 : i32
    return %c0_i32, %c0_i32_0 : i32, i32
  }
  func.func @transform_3(%arg0: i32, %arg1: i32) -> (i32, i32, i32) {
    %c0_i32 = arith.constant 0 : i32
    %c0_i32_0 = arith.constant 0 : i32
    %c0_i32_1 = arith.constant 0 : i32
    return %arg1, %c0_i32, %c0_i32_0 : i32, i32, i32
  }
  func.func @transform_4(%arg0: i32, %arg1: i32) -> (i32, i32, i32) {
    %c0_i32 = arith.constant 0 : i32
    %c0_i32_0 = arith.constant 0 : i32
    %c0_i32_1 = arith.constant 0 : i32
    return %arg1, %c0_i32, %c0_i32_0 : i32, i32, i32
  }
  func.func @transform_5(%arg0: i32, %arg1: i32) -> (i32, i32, i32) {
    %c0_i32 = arith.constant 0 : i32
    %c0_i32_0 = arith.constant 0 : i32
    %c0_i32_1 = arith.constant 0 : i32
    return %arg1, %c0_i32, %c0_i32_0 : i32, i32, i32
  }
  func.func @transform_6(%arg0: i32, %arg1: i32) -> (i32, i32, i32) {
    %c0_i32 = arith.constant 0 : i32
    %c0_i32_0 = arith.constant 0 : i32
    %c0_i32_1 = arith.constant 0 : i32
    return %arg1, %c0_i32, %c0_i32_0 : i32, i32, i32
  }
  func.func @transform_7(%arg0: i32, %arg1: i32) -> (i32, i32) {
    %c0_i32 = arith.constant 0 : i32
    %c0_i32_0 = arith.constant 0 : i32
    %c0_i32_1 = arith.constant 0 : i32
    return %c0_i32, %c0_i32_0 : i32, i32
  }
  func.func @transform_8(%arg0: i32, %arg1: i32) -> (i32, i32) {
    %c0_i32 = arith.constant 0 : i32
    %c0_i32_0 = arith.constant 0 : i32
    %c0_i32_1 = arith.constant 0 : i32
    return %c0_i32, %c0_i32_0 : i32, i32
  }
  func.func @transform_9(%arg0: i32, %arg1: i32) -> (i32, i32, i32) {
    %c0_i32 = arith.constant 0 : i32
    %c0_i32_0 = arith.constant 0 : i32
    return %arg1, %arg0, %c0_i32 : i32, i32, i32
  }
  func.func @transform_10(%arg0: i32, %arg1: i32) -> (i32, i32) {
    %c0_i32 = arith.constant 0 : i32
    %c0_i32_0 = arith.constant 0 : i32
    return %arg0, %c0_i32 : i32, i32
  }
}

</mosaic_0001>

<bundles_post_ra>
// kernel: tpu_custom_call.1
= control target key start
LH: loop header
LB: loop body
LE: loop exit
PB: predicated region body
PF: predicated region fallthrough
CT: control target
= control target key end

     0   :  { %s1652_s0 = inlined_call_operand.vmem [shape: bf16[8,192], index: 0, kind: input, shape index: {}]   ;;  %s1653_s1 = inlined_call_operand.vmem [shape: bf16[192,32], index: 1, kind: input, shape index: {}]   ;;  %s1654_s2 = inlined_call_operand.vmem [shape: f32[1,32], index: 2, kind: input, shape index: {}]   ;;  %s1655_s3 = inlined_call_operand.vmem [shape: bf16[2,32,64], index: 3, kind: input, shape index: {}]   ;;  %s1656_s4 = inlined_call_operand.vmem [shape: f32[2,1,64], index: 4, kind: input, shape index: {}]   ;;  %s1657_s5 = inlined_call_operand.vmem [shape: bf16[2,64,32], index: 5, kind: input, shape index: {}]   ;;  %s1658_s6 = inlined_call_operand.vmem [shape: f32[2,1,32], index: 6, kind: input, shape index: {}]   ;;  %s1659_s7 = inlined_call_operand.vmem [shape: bf16[32,128], index: 7, kind: input, shape index: {}]   ;;  %s1660_s8 = inlined_call_operand.vmem [shape: f32[1,128], index: 8, kind: input, shape index: {}]   ;;  %s1661_s9 = inlined_call_operand.hbm [shape: f32[2,8,64], index: 9, kind: output, shape index: {0}]   ;;  %s1662_s10 = inlined_call_operand.hbm [shape: f32[2,128], index: 10, kind: output, shape index: {1}]  }
   0x1   :  { %1671 = sst [smem:[#allocation16_spill]] %s1662_s10 }
   0x2   :  { %16 = vsyncpa [#allocation4], 0 }
   0x3   :  { %18 = vsyncpa [#allocation4 + $0x1], 0 }
   0x4   :  { %19 = vsyncpa [#allocation6], 0  ;;  %s1434_s13 = smov 0   ;;  %s1436_s14 = smov 0  }
   0x5   :  { %s1438_s15 = smov 0   ;;  %s1440_s16 = smov 0  }
   0x6   :  { %s1442_s17 = smov 0   ;;  %s1444_s18 = smov 0  }
   0x7 LB: > { %1672 = sst [smem:[#allocation9_spill]] %s1350_s13  ;;  %s1077_s19 = sadd.s32 4294967295, %s1370_s18   ;;  %s1370_s18 = sphi %s1444_s18, %s25_s18   ;;  %s1366_s17 = sphi %s1442_s17, %s1691_s17   ;;  %s1362_s16 = sphi %s1440_s16, %s1690_s16   ;;  %s1358_s15 = sphi %s1438_s15, %s1689_s15   ;;  %s1354_s14 = sphi %s1436_s14, %s1693_s14   ;;  %s1350_s13 = sphi %s1434_s13, %s1692_s13  }
   0x8   : > { %1673 = sst [smem:[#allocation10_spill]] %s1358_s15  ;;  %s1078_s20 = sadd.s32 4294967294, %s1370_s18  }
   0x9   : > { %1674 = sst [smem:[#allocation11_spill]] %s1366_s17  ;;  %s34_s21 = sadd.s32 1, %s1366_s17 }
   0xa   : > { %1675 = sst [smem:[#allocation12_spill]] %s1370_s18  ;;  %s260_s22 = sadd.s32 1, %s1358_s15 }
   0xb   : > { %p35_p0 = scmp.ge.s32.totalorder %s34_s21, 2  ;;  %p270_p1 = scmp.ne.s32.totalorder %s1358_s15, %s1354_s14 }
   0xc   : > { %p1470_p2 = scmp.eq.s32.totalorder %s1077_s19, 1  ;;  %p276_p3 = scmp.ne.s32.totalorder %s1354_s14, %s1350_s13 }
   0xd   : > { %s1695_s21 = smov (%p35_p0, %s34_s21), 0  ;;  %p277_p5 = scmp.eq.s32.totalorder %s1078_s20, 1 }
   0xe   : > { %1677 = sst [smem:[#allocation13_spill]] %s1695_s21  ;;  %p1480_p4 = por %p1470_p2, %p270_p1 }
   0xf   : > { %s255_s25 = ssub.s32 %s1366_s17, %s1695_s21  ;;  %p1082_p6 = scmp.ge.s32.totalorder %s1370_s18, 1 }
  0x10   : > { %p258_p7 = scmp.eq.s32.totalorder %s255_s25, 0  ;;  %p1487_p8 = por %p277_p5, %p276_p3 }
  0x11   : > { %p369_p9 = scmp.lt.s32.totalorder %s1370_s18, 3 }
  0x12   : > { %s1679_s26 = scalar_select %p1487_p8, 1, 0 }
  0x13   : > { %s1493_s27 = scalar_select %p258_p7, %s1358_s15, %s260_s22  }
  0x14   : > { %1680 = sst [smem:[#allocation14_spill]] %s1679_s26  ;;  %p370_p10 = pnand %p1082_p6, %p369_p9 }
  0x15   : > { %1681 = sst [smem:[#allocation15_spill]] %s1493_s27  ;;  %s1665_s28 = sand.u32 (!%p370_p10), 1, %s1354_s14  }
  0x16   : > { %373 = sbr.rel (%p370_p10) target bundleno = 1156 (0x484), region = 56  ;;  %p428_p11 = scmp.lt.s32.totalorder (!%p370_p10), %s1362_s16, 1 }
  0x17   : > { %s1499_s29 = sshll.u32 (!%p370_p10), %s1665_s28, 3  ;;  %p1088_p12 = scmp.ne.s32.totalorder (!%p370_p10), %s1362_s16, 0 }
  0x18   : > { %s420_s10 = scalar_lea.vmem (!%p370_p10), [#allocation3], %s1499_s29 }
  0x1b   : > { %s1502_s30 = scalar_select %p428_p11, %s1362_s16, 1 }
  0x1c   : > { %448 = sbr.rel (%p1088_p12) target bundleno = 281 (0x119), region = 60 }
  0x1d   : > { %s1127_s11 = sshll.u32 %s1502_s30, 4  ;;  %s435_s20 = scalar_lea.vmem %s1656_s4, %s1502_s30 }
  0x1e   : > { %s1512_s21 = scalar_lea.vmem %s1655_s3, %s1127_s11  ;;  %s1128_s17 = sshll.u32 %s1502_s30, 5 }
  0x1f   : > { %s1518_s15 = scalar_lea.vmem %s1657_s5, %s1128_s17  ;;  %s443_s18 = scalar_lea.vmem %s1658_s6, %s1502_s30 }
  0x21   : > { %v1242_v0 = vld [vmem:[%s1653_s1 + $0x38] sm:$0xff]   ;;  %v1372_v1 = vmov 0   ;;  %v1243_v2 = vld [vmem:[%s1653_s1 + $0x30] sm:$0xff]   ;;  %v1244_v3 = vld [vmem:[%s1653_s1 + $0x28] sm:$0xff]   ;;  %vm559_vm0 = vcmask 523264   ;;  %vm603_vm1 = vcmask 261120  }
  0x22   : > { %563 = vmatprep.subr.bf16.mxu0 %v1372_v1  ;;  %v1245_v4 = vld [vmem:[%s1653_s1 + $0x20] sm:$0xff]   ;;  %v1246_v7 = vld [vmem:[%s1653_s1 + $0x18] sm:$0xff]   ;;  %v1247_v8 = vld [vmem:[%s1653_s1 + $0x10] sm:$0xff]  }
  0x23   : > { %564 = vmatpush1.bf16.msra.mxu0 %v1242_v0  ;;  %v449_v5 = vld [vmem:[%s1652_s0] sm:$0xff]  ;;  %v1248_v9 = vld [vmem:[%s1653_s1 + $0x8] sm:$0xff]   ;;  %v1250_v11 = vld [vmem:[%s1653_s1 + $0x58] sm:$0xff]  }
  0x24   : > { %565 = vmatprep.subr.bf16.mxu0 %v1372_v1  ;;  %v1091_v6 = vcombine.high %v449_v5, %v449_v5  ;;  %v1249_v10 = vld [vmem:[%s1653_s1] sm:$0xff]   ;;  %v1251_v12 = vld [vmem:[%s1653_s1 + $0x50] sm:$0xff]   ;;  %v1252_v13 = vld [vmem:[%s1653_s1 + $0x48] sm:$0xff]   ;;  %v1090_v15 = vcombine.low %v449_v5, %v449_v5 }
  0x25   : > { %v1253_v14 = vld [vmem:[%s1653_s1 + $0x40] sm:$0xff]  }
  0x26   : > { %1104 = vmatprep.mubr.msk.bf16.mxu0 %vm559_vm0, %v1091_v6  ;;  %v1089_v16 = vld [vmem:[%s1654_s2] ss:$0 sm:$0xff] }
  0x27   : > { %566 = vmatpush1.bf16.msra.mxu0 %v1243_v2 }
  0x28   : > { %567 = vmatprep.subr.bf16.mxu0 %v1372_v1 }
  0x2b   : > { %568 = vmatpush1.bf16.msra.mxu0 %v1244_v3 }
  0x2c   : > { %569 = vmatprep.subr.bf16.mxu0 %v1372_v1 }
  0x2f   : > { %570 = vmatpush1.bf16.msra.mxu0 %v1245_v4 }
  0x30   : > { %571 = vmatprep.subr.bf16.mxu0 %v1372_v1 }
  0x33   : > { %572 = vmatpush1.bf16.msra.mxu0 %v1246_v7 }
  0x34   : > { %573 = vmatprep.subr.bf16.mxu0 %v1372_v1 }
  0x37   : > { %574 = vmatpush1.bf16.msra.mxu0 %v1247_v8 }
  0x38   : > { %575 = vmatprep.subr.bf16.mxu0 %v1372_v1 }
  0x3b   : > { %576 = vmatpush1.bf16.msra.mxu0 %v1248_v9 }
  0x3c   : > { %577 = vmatprep.subr.bf16.mxu0 %v1372_v1 }
  0x3f   : > { %578 = vmatpush1.bf16.msra.mxu0 %v1249_v10 }
  0x40   : > { %587 = vmatprep.subr.bf16.mxu0 %v1372_v1 }
  0x43   : > { %588 = vmatpush2.bf16.msra.mxu0 %v1250_v11 }
  0x44   : > { %589 = vmatprep.subr.bf16.mxu0 %v1372_v1 }
  0x47   : > { %590 = vmatpush2.bf16.msra.mxu0 %v1251_v12 }
  0x48   : > { %591 = vmatprep.subr.bf16.mxu0 %v1372_v1 }
  0x4b   : > { %592 = vmatpush2.bf16.msra.mxu0 %v1252_v13 }
  0x4c   : > { %593 = vmatprep.subr.bf16.mxu0 %v1372_v1 }
  0x4f   : > { %594 = vmatpush2.bf16.msra.mxu0 %v1253_v14 }
  0x52   : > { %596 = vmatmul.mubr.bf16.vlgmr.msra.gmra.mxu0 %v1090_v15 }
 0x112   : > { %v597_v17 = vpop.f32.mrf.mxu0 }
 0x113   : > { %v598_v18 = vadd.f32 %v1089_v16, %v597_v17 }
 0x114   : > { %v599_v19 = vpop.f32.mrf.mxu0 }
 0x115   : > { %604 = vst.msk [vmem:[#allocation2] sm:$0xff] %vm603_vm1, %v598_v18 }
 0x116   : > { %v600_v20 = vpop.f32.mrf.mxu0 }
 0x118   : > { %v601_v21 = vpop.f32.mrf.mxu0 }
 0x119 PF: > { %v1256_v22 = vld [vmem:[%s1512_s21 + $0x8] sm:$0xff]   ;;  %v1373_v23 = vmov 0.0   ;;  %v1257_v24 = vld [vmem:[%s1512_s21] sm:$0xff]   ;;  %vm1374_vm2 = vmmov 0   ;;  %vm630_vm3 = vcmask 261120   ;;  %v1258_v27 = vld [vmem:[%s1518_s15 + $0x18] sm:$0xff]  }
 0x11a   : > { %1142 = vmatprep.subr.bf16.mxu0 %v1373_v23  ;;  %1150 = vmatprep.subr.bf16.mxu1 %v1373_v23  ;;  %v1259_v28 = vld [vmem:[%s1518_s15 + $0x10] sm:$0xff]   ;;  %v1260_v29 = vld [vmem:[%s1518_s15 + $0x8] sm:$0xff]   ;;  %v1261_v30 = vld [vmem:[%s1518_s15] sm:$0xff]   ;;  %vm679_vm4 = vcmask 523264   ;;  %p1115_p13 = scmp.ne.s32.totalorder %s1362_s16, 1 }
 0x11b   : > { %1143 = vmatpush3.bf16.msra.mxu0 %v1256_v22  ;;  %1146 = vmatprep.mubr.msk.bf16.mxu0 %vm1374_vm2, %v1373_v23  ;;  %v1105_v31 = vld [vmem:[%s435_s20] ss:$0 sm:$0xff] }
 0x11c   : > { %v605_v25 = vld [vmem:[#allocation2] sm:$0xff]  ;;  %1144 = vmatprep.subr.bf16.mxu0 %v1373_v23  ;;  %1158 = vmatprep.mubr.msk.bf16.mxu1 %vm1374_vm2, %v1373_v23 }
 0x11d   : > { %v606_v26 = vpack.c.bf16 %v605_v25, %v605_v25  ;;  %1151 = vmatpush3.bf16.msra.mxu1 %v1258_v27  ;;  %v1109_v43 = vld [vmem:[%s443_s18] ss:$0 sm:$0xff] }
 0x11e   : > { %1152 = vmatprep.subr.bf16.mxu1 %v1373_v23 }
 0x11f   : > { %1145 = vmatpush3.bf16.msra.mxu0 %v1257_v24 }
 0x121   : > { %1153 = vmatpush3.bf16.msra.mxu1 %v1259_v28 }
 0x122   : > { %1147 = vmatmul.mubr.msk.bf16.vlgmr.msra.gmra.mxu0 %vm630_vm3, %v606_v26  ;;  %1154 = vmatprep.subr.bf16.mxu1 %v1373_v23 }
 0x125   : > { %1155 = vmatpush3.bf16.msra.mxu1 %v1260_v29 }
 0x126   : > { %1156 = vmatprep.subr.bf16.mxu1 %v1373_v23 }
 0x129   : > { %1157 = vmatpush3.bf16.msra.mxu1 %v1261_v30 }
 0x1e2   : > { %v668_v32 = vpop.f32.mrf.mxu0 }
 0x1e3   : > { %v669_v33 = vadd.f32 %v1105_v31, %v668_v32 }
 0x1e4   : > { %v1148_v34 = vpop.f32.mrf.mxu0 }
 0x1e5   : > { %v675_v35 = vmul.f32 0.70710677, %v669_v33  ;;  %v674_v39 = vmul.f32 0.5, %v669_v33 }
 0x1e6   : > { %v671_v36 = vpop.f32.mrf.mxu0 }
 0x1e7   : > { %1262 = verf.f32 %v675_v35 }
 0x1e8   : > { %v1149_v37 = vpop.f32.mrf.mxu0 }
 0x1f4   : > { %v1263_v38 = vpop.eup %1262 }
 0x1f5   : > { %v677_v40 = vadd.f32 1.0, %v1263_v38 }
 0x1f7   : > { %v678_v41 = vmul.f32 %v677_v40, %v674_v39 }
 0x1f9   : > { %v681_v42 = vpack.c.bf16 %v678_v41, %v678_v41  ;;  %680 = vst.msk [vmem:[%s420_s10] sm:$0xff] %vm679_vm4, %v678_v41 }
 0x1fb   : > { %1159 = vmatmul.mubr.msk.bf16.vlgmr.msra.gmra.mxu1 %vm679_vm4, %v681_v42 }
 0x2bb   : > { %v758_v44 = vpop.f32.mrf.mxu1 }
 0x2bc   : > { %v759_v45 = vadd.f32 %v1109_v43, %v758_v44 }
 0x2bd   : > { %v1160_v46 = vpop.f32.mrf.mxu1  ;;  %769 = sbr.rel (%p1115_p13) target bundleno = 1111 (0x457), region = 64 }
 0x2be   : > { %v764_v47 = vadd.f32 %v759_v45, %v605_v25 }
 0x2bf   : > { %v761_v48 = vpop.f32.mrf.mxu1 }
 0x2c0   : > { %765 = vst.msk [vmem:[#allocation2] sm:$0xff] %vm630_vm3, %v764_v47 }
 0x2c1   : > { %v1161_v49 = vpop.f32.mrf.mxu1 }
 0x2c2   : > { %v770_v50 = vlaneseq  ;;  %v1264_v51 = vld [vmem:[%s1659_s7 + $0x8] sm:$0xff]   ;;  %v1375_v52 = vmov 0.0   ;;  %vm1376_vm5 = vmmov 0   ;;  %vm781_vm8 = vcmask 64512   ;;  %v1265_v59 = vld [vmem:[%s1659_s7] sm:$0xff]  }
 0x2c3   : > { %1162 = vmatprep.subr.mxu0 %v1375_v52  ;;  %1164 = vmatprep.mubr.msk.f32.mxu0 %vm1376_vm5, %v1375_v52  ;;  %v1117_v63 = vld [vmem:[%s1660_s8] ss:$0 sm:$0xff] }
 0x2c4   : > { %1163 = vmatpush3.msra.mxu0 %v764_v47  ;;  %v771_v53 = vshrl.u32 %v770_v50, 7  ;;  %v773_v54 = vand.u32 127, %v770_v50  ;;  %1167 = vmatprep.subr.bf16.mxu1 %v1375_v52 }
 0x2c5   : > { %1168 = vmatpush3.bf16.msra.mxu1 %v1264_v51  ;;  %1171 = vmatprep.mubr.msk.bf16.mxu1 %vm1376_vm5, %v1375_v52 }
 0x2c6   : > { %v774_v55 = vmul.u32 4, %v771_v53  ;;  %v776_v56 = vadd.s32 1, %v771_v53  ;;  %1169 = vmatprep.subr.bf16.mxu1 %v1375_v52 }
 0x2c8   : > { %vm775_vm6 = vcmp.ge.s32.totalorder %v773_v54, %v774_v55  ;;  %v777_v57 = vmul.u32 4, %v776_v56 }
 0x2c9   : > { %1170 = vmatpush3.bf16.msra.mxu1 %v1265_v59 }
 0x2ca   : > { %vm778_vm7 = vcmp.lt.s32.totalorder %v773_v54, %v777_v57 }
 0x2cb   : > { %vm779_vm9 = vmand %vm775_vm6, %vm778_vm7 }
 0x2cc   : > { %v780_v58 = vsel %vm779_vm9, 0.25, %v1375_v52 }
 0x2cd   : > { %1165 = vmatmul.mubr.msk.f32.vlgmr.msra.gmra.mxu0 %vm781_vm8, %v780_v58 }
 0x38d   : > { %v851_v60 = vpop.f32.mrf.mxu0 }
 0x38e   : > { %v855_v61 = vpack.c.bf16 %v851_v60, %v851_v60 }
 0x38f   : > { %v1166_v62 = vpop.f32.mrf.mxu0 }
 0x390   : > { %1172 = vmatmul.mubr.msk.bf16.vlgmr.msra.gmra.mxu1 %vm630_vm3, %v855_v61 }
 0x450   : > { %v916_v0 = vpop.f32.mrf.mxu1 }
 0x451   : > { %v917_v1 = vadd.f32 %v1117_v63, %v916_v0 }
 0x452   : > { %v1173_v2 = vpop.f32.mrf.mxu1 }
 0x453   : > { %922 = vst [vmem:[#allocation5] sm:$0x3] %v917_v1 }
 0x454   : > { %v919_v3 = vpop.f32.mrf.mxu1 }
 0x456   : > { %v1174_v4 = vpop.f32.mrf.mxu1 }
 0x457 PF: > { %s1122_s22 = sshll.u32 %s1362_s16, 7  ;;  %s938_s27 = sshll.u32 %s420_s10, 4  ;;  %s939_s27 = int_to_ptr.vmem [resolvable:$true] %s938_s27 }
 0x458   : > { %s936_s26 = scalar_lea.hbm %s1661_s9, %s1122_s22  ;;  %s1682_s21 = sand.u32 1, %s1354_s14  }
 0x459   : > { %s924_s28 = scalar_lea.sflag [#allocation4], %s1682_s21  ;;  %s1266_s15 = scalar_lea.vmem %s939_s27, 128 }
 0x45a   : > { %p1267_p0 = scmp.ne.s32.totalorder %s939_s27, %s1266_s15  ;;  %s1377_s25 = smov [#allocation3]  }
 0x45b   : > { %s1270_s20 = sshll.u32 %s1377_s25, 4  ;;  %s1271_s20 = int_to_ptr.vmem [resolvable:$false] %s1270_s20 }
 0x45c   : > { %p1268_p1 = pnand %p1267_p0, %p1480_p4  ;;  %s1272_s12 = scalar_lea.vmem %s1271_s20, 256 }
 0x45d   : > { %p1273_p5 = scmp.lt.s32.totalorder %s939_s27, %s1271_s20  ;;  %p1274_p6 = scmp.lt.s32.totalorder %s1272_s12, %s1266_s15 }
 0x45e   : > { %p1269_p3 = pneg %p1268_p1 }
 0x45f   : > { %p1275_p7 = por %p1274_p6, %p1273_p5 }
 0x461   : > { %p1276_p9 = pnand %p1275_p7, %p1269_p3 }
 0x463   : > { %1279 = shalt.err (!%p1276_p9)
}
 0x464   : > { %s1280_s16 = scalar_lea.hbm %s936_s26, 128  ;;  %s1284_s18 = scalar_lea.hbm %s1661_s9, 256 }
 0x465   : > { %p1281_p10 = scmp.ne.s32.totalorder %s936_s26, %s1280_s16  ;;  %p1285_p13 = scmp.lt.s32.totalorder %s936_s26, %s1661_s9 }
 0x466   : > { %p1286_p0 = scmp.lt.s32.totalorder %s1284_s18, %s1280_s16 }
 0x467   : > { %p1282_p11 = pnand %p1281_p10, %p1480_p4 }
 0x468   : > { %p1287_p1 = por %p1286_p0, %p1285_p13 }
 0x469   : > { %p1283_p12 = pneg %p1282_p11 }
 0x46b   : > { %p1288_p8 = pnand %p1287_p1, %p1283_p12 }
 0x46d   : > { %1291 = shalt.err (!%p1288_p8)
}
 0x46e   : > { %1175 = dma.vmem_to_hbm [thread:$0]  (%p1480_p4), %s939_s27, 128, %s936_s26, %s924_s28  }
 0x46f   : > { %s1378_s11 = smov [#allocation5]  }
 0x470   : > { %s951_s22 = sshll.u32 %s1378_s11, 4  ;;  %s952_s22 = int_to_ptr.vmem [resolvable:$true] %s951_s22 }
 0x471   : > { %s1292_s17 = scalar_lea.vmem %s952_s22, 32  ;;  %p1299_p7 = scmp.lt.s32.totalorder %s952_s22, %s952_s22 }
 0x472   : > { %p1293_p3 = scmp.ne.s32.totalorder %s952_s22, %s1292_s17  ;;  %p1300_p9 = scmp.lt.s32.totalorder %s1292_s17, %s1292_s17 }
 0x474   : > { %p1294_p5 = pnand %p1293_p3, %p1470_p2  ;;  %p1301_p10 = por %p1300_p9, %p1299_p7 }
 0x476   : > { %p1295_p6 = pneg %p1294_p5 }
 0x478   : > { %p1302_p11 = pnand %p1301_p10, %p1295_p6 }
 0x47a   : > { %1305 = shalt.err (!%p1302_p11)
}
 0x47b   : > { %s1683_s24 = sld [smem:[#allocation16_spill]] }
 0x481   : > { %1177 = dma.vmem_to_hbm [thread:$0]  (%p1470_p2), %s952_s22, 32, %s1683_s24, [#allocation6]  }
 0x482   : > { %1341 = dma.done.wait (%p1470_p2), [#allocation6], 32  }
 0x483   : > { %1343 = vsyncadd (%p1470_p2), [#allocation6], 4294967264 }
 0x484 PF: > { %s1684_s26 = sld [smem:[#allocation12_spill]] }
 0x485   : > { %s1685_s27 = sld [smem:[#allocation9_spill]] }
 0x486   : > { %s1686_s28 = sld [smem:[#allocation14_spill]] }
 0x48a   : > { %p1187_p4 = scmp.ge.s32.totalorder %s1684_s26, 2 }
 0x48b   : > { %s967_s15 = sand.u32 1, %s1685_s27  }
 0x48c   : > { %p1687_p8 = scmp.ne.s32.totalorder %s1686_s28, 0  ;;  %s968_s25 = scalar_lea.sflag [#allocation4], %s967_s15 }
 0x48e   : > { %p1182_p12 = pnand %p1187_p4, %p1687_p8 }
 0x490   : > { %p1183_p13 = pneg %p1182_p12 }
 0x492   : > { %1345 = dma.done.wait (%p1183_p13), %s968_s25, 128  }
 0x493   : > { %1347 = vsyncadd (%p1183_p13), %s968_s25, 4294967168  ;;  %s25_s18 = sadd.s32 1, %s1684_s26   ;;  %s1688_s20 = sld [smem:[#allocation10_spill]] }
 0x494   : > { %p22_p0 = scmp.ge.s32.totalorder %s25_s18, 4   ;;  %s1689_s15 = sld [smem:[#allocation15_spill]] }
 0x495   : > { %s1690_s16 = sld [smem:[#allocation11_spill]]  ;;  %s1692_s13 = smov %s1354_s14 }
 0x496   : > { %s1691_s17 = sld [smem:[#allocation13_spill]]  ;;  %24 = sbr.rel (!%p22_p0) target bundleno = 7 (0x7), region = 120 }
 0x499   : > { %s1693_s14 = smov %s1688_s20 }
 0x49b   :  { %973 = vsyncpa [#allocation4], 1 }
 0x49c   :  { %975 = vsyncpa [#allocation4 + $0x1], 1 }
 0x49d   :  { %976 = vsyncpa [#allocation6], 1 }

</bundles_post_ra>
